<compile_context>
chip_gen: v5e
topology: v5e:2x2
jax: 0.10.0
libtpu: 0.0.40
codegen_flags: <defaults>
</compile_context>

<pallas_src>
import functools

import jax
import jax.numpy as jnp
from jax.experimental import pallas as pl
from jax.experimental.pallas import tpu as pltpu


def _round_up(x, m):
    return (x + m - 1) // m * m


def _correlator_kernel(p_ref, w1_ref, b1_ref, w2_ref, b2_ref, o_ref):
    # p_ref : (tm, Kp)     im2col patches tile (rows = flattened N*Ho*Wo)
    # w*_ref: (Kp, Cpad)   packed conv weights, lane-dense output channels
    # b*_ref: (1, Cpad)    packed biases
    # o_ref : (tm, Cpad)
    p = p_ref[...]
    y1 = jnp.dot(p, w1_ref[...], preferred_element_type=jnp.float32) + b1_ref[...]
    y2 = jnp.dot(p, w2_ref[...], preferred_element_type=jnp.float32) + b2_ref[...]
    o_ref[...] = (jnp.maximum(y1, 0.0) * jnp.maximum(y2, 0.0)).astype(o_ref.dtype)


def correlator_conv_pallas(x, w1p, b1p, w2p, b2p, *, kernel_size, outsize):
    """x: (N, Cin, H, W).  w*p: (Kp, Cpad) packed weights.  b*p: (1, Cpad)."""
    N, Cin, H, W = x.shape
    kh = kw = kernel_size
    Ho, Wo = H - kh + 1, W - kw + 1
    K = kh * kw * Cin
    Kp, Cpad = w1p.shape

    # im2col once, shared by both conv branches; channels-last keeps Cin on lanes.
    x_nhwc = jnp.transpose(x, (0, 2, 3, 1))
    patches = [x_nhwc[:, i:i + Ho, j:j + Wo, :]
               for i in range(kh) for j in range(kw)]
    p = jnp.concatenate(patches, axis=-1).reshape(N * Ho * Wo, K)

    M = N * Ho * Wo
    tm = min(256, _round_up(M, 8))          # row tile; pipelined / megacore-sharded
    M_pad = _round_up(M, tm)
    p = jnp.pad(p, ((0, M_pad - M), (0, Kp - K)))
    grid = M_pad // tm

    cost = pl.CostEstimate(
        flops=2 * 2 * M_pad * Kp * Cpad,
        transcendentals=0,
        bytes_accessed=4 * (p.size + 2 * w1p.size + 2 * b1p.size + M_pad * Cpad),
    )

    out = pl.pallas_call(
        _correlator_kernel,
        out_shape=jax.ShapeDtypeStruct((M_pad, Cpad), x.dtype),
        grid_spec=pltpu.PrefetchScalarGridSpec(
            num_scalar_prefetch=0,
            grid=(grid,),
            in_specs=[
                pl.BlockSpec((tm, Kp), lambda i: (i, 0)),
                pl.BlockSpec((Kp, Cpad), lambda i: (0, 0)),
                pl.BlockSpec((1, Cpad), lambda i: (0, 0)),
                pl.BlockSpec((Kp, Cpad), lambda i: (0, 0)),
                pl.BlockSpec((1, Cpad), lambda i: (0, 0)),
            ],
            out_specs=pl.BlockSpec((tm, Cpad), lambda i: (i, 0)),
        ),
        compiler_params=pltpu.CompilerParams(
            dimension_semantics=("parallel",),
        ),
        cost_estimate=cost,
    )(p, w1p, b1p, w2p, b2p)

    out = out[:M, :outsize].reshape(N, Ho, Wo, outsize)
    return jnp.transpose(out, (0, 3, 1, 2))          # (N, Cout, Ho, Wo)


def _pack_conv_weight(w, k_pad, c_pad):
    # (Cout, Cin, KH, KW) -> (KH*KW*Cin, Cout), zero-padded to (k_pad, c_pad).
    cout, cin, kh, kw = w.shape
    wp = jnp.transpose(w, (2, 3, 1, 0)).reshape(kh * kw * cin, cout)
    return jnp.pad(wp, ((0, k_pad - kh * kw * cin), (0, c_pad - cout)))


def _pack_bias(b, c_pad):
    return jnp.pad(b, (0, c_pad - b.shape[0])).reshape(1, c_pad)


class CorrelatorConvolutionModelPallas:
    """JAX/Pallas port of the PyTorch CorrelatorConvolutionModel."""

    def __init__(self, insize, outsize, key, kernel_size=3):
        self.insize = insize
        self.outsize = outsize
        self.kernel_size = kernel_size

        k1, k2, k3, k4 = jax.random.split(key, 4)
        fan_in = insize * kernel_size * kernel_size
        bound = 1.0 / (fan_in ** 0.5)
        wshape = (outsize, insize, kernel_size, kernel_size)
        self.w1 = jax.random.uniform(k1, wshape, jnp.float32, -bound, bound)
        self.b1 = jax.random.uniform(k2, (outsize,), jnp.float32, -bound, bound)
        self.w2 = jax.random.uniform(k3, wshape, jnp.float32, -bound, bound)
        self.b2 = jax.random.uniform(k4, (outsize,), jnp.float32, -bound, bound)

        # Pack + lane-pad once (no per-call transpose / HBM re-layout).
        c_pad = _round_up(outsize, 128)
        k_pad = _round_up(fan_in, 8)
        self.w1_packed = _pack_conv_weight(self.w1, k_pad, c_pad)
        self.w2_packed = _pack_conv_weight(self.w2, k_pad, c_pad)
        self.b1_packed = _pack_bias(self.b1, c_pad)
        self.b2_packed = _pack_bias(self.b2, c_pad)

        self._forward = jax.jit(functools.partial(
            correlator_conv_pallas, kernel_size=kernel_size, outsize=outsize))

    def __call__(self, x):
        return self._forward(x, self.w1_packed, self.b1_packed,
                             self.w2_packed, self.b2_packed)


if __name__ == "__main__":
    key = jax.random.PRNGKey(0)
    k_model, k_x = jax.random.split(key)

    batch, insize, outsize, spatial = 2, 4, 8, 16
    model = CorrelatorConvolutionModelPallas(insize, outsize, k_model)
    x = jax.random.normal(k_x, (batch, insize, spatial, spatial), jnp.float32)

    out = jax.block_until_ready(model(x))

    # Reference with XLA's conv (same semantics: valid 3x3 conv + bias).
    def conv_ref(xx, w, b):
        y = jax.lax.conv_general_dilated(
            xx, w, window_strides=(1, 1), padding="VALID",
            dimension_numbers=("NCHW", "OIHW", "NCHW"))
        return y + b[None, :, None, None]

    ref = (jnp.maximum(conv_ref(x, model.w1, model.b1), 0.0)
           * jnp.maximum(conv_ref(x, model.w2, model.b2), 0.0))

    ho = spatial - model.kernel_size + 1
    assert out.shape == (batch, outsize, ho, ho), out.shape
    # Loose-ish tolerance: TPU default matmul/conv precision may use bf16
    # passes whose rounding can differ between the MXU kernel and XLA's conv.
    assert jnp.allclose(out, ref, atol=2e-2, rtol=2e-2)

    print("KERNEL_OK")
</pallas_src>

<mosaic_0001>
module attributes {stable_mosaic.version = 11 : i64} {
  func.func @_correlator_kernel(%arg0: i32, %arg1: memref<256x40xf32, #tpu.memory_space<vmem>>, %arg2: memref<40x128xf32, #tpu.memory_space<vmem>>, %arg3: memref<1x128xf32, #tpu.memory_space<vmem>>, %arg4: memref<40x128xf32, #tpu.memory_space<vmem>>, %arg5: memref<1x128xf32, #tpu.memory_space<vmem>>, %arg6: memref<256x128xf32, #tpu.memory_space<vmem>>) attributes {dimension_semantics = [#tpu.dimension_semantics<parallel>], iteration_bounds = array<i64: 2>, scalar_prefetch = 0 : i64, scratch_operands = 0 : i64, tpu.core_type = #tpu.core_type<tc>, window_params = [{transform_indices = @transform_0, window_bounds = array<i64: 256, 40>}, {pipeline_mode = #tpu.pipeline_mode<synchronous>, transform_indices = @transform_1, window_bounds = array<i64: 40, 128>}, {pipeline_mode = #tpu.pipeline_mode<synchronous>, transform_indices = @transform_2, window_bounds = array<i64: 1, 128>}, {pipeline_mode = #tpu.pipeline_mode<synchronous>, transform_indices = @transform_3, window_bounds = array<i64: 40, 128>}, {pipeline_mode = #tpu.pipeline_mode<synchronous>, transform_indices = @transform_4, window_bounds = array<i64: 1, 128>}, {transform_indices = @transform_5, window_bounds = array<i64: 256, 128>}]} {
    %c0 = arith.constant 0 : index
    %c0_0 = arith.constant 0 : index
    %0 = vector.load %arg1[%c0, %c0_0] : memref<256x40xf32, #tpu.memory_space<vmem>>, vector<256x40xf32>
    %c0_1 = arith.constant 0 : index
    %c0_2 = arith.constant 0 : index
    %1 = vector.load %arg2[%c0_1, %c0_2] : memref<40x128xf32, #tpu.memory_space<vmem>>, vector<40x128xf32>
    %cst = arith.constant dense<0.000000e+00> : vector<256x128xf32>
    %2 = tpu.matmul %0, %1, %cst {dimension_numbers = #tpu.dot_dimension_numbers<[1], [0], [0], [1], [0, 0, 1, 1], [], []>} : vector<256x40xf32>, vector<40x128xf32>, vector<256x128xf32> -> vector<256x128xf32>
    %c0_3 = arith.constant 0 : index
    %c0_4 = arith.constant 0 : index
    %3 = vector.load %arg3[%c0_3, %c0_4] : memref<1x128xf32, #tpu.memory_space<vmem>>, vector<1x128xf32>
    %4 = vector.broadcast %3 : vector<1x128xf32> to vector<256x128xf32>
    %5 = arith.addf %2, %4 : vector<256x128xf32>
    %c0_5 = arith.constant 0 : index
    %c0_6 = arith.constant 0 : index
    %6 = vector.load %arg4[%c0_5, %c0_6] : memref<40x128xf32, #tpu.memory_space<vmem>>, vector<40x128xf32>
    %cst_7 = arith.constant dense<0.000000e+00> : vector<256x128xf32>
    %7 = tpu.matmul %0, %6, %cst_7 {dimension_numbers = #tpu.dot_dimension_numbers<[1], [0], [0], [1], [0, 0, 1, 1], [], []>} : vector<256x40xf32>, vector<40x128xf32>, vector<256x128xf32> -> vector<256x128xf32>
    %c0_8 = arith.constant 0 : index
    %c0_9 = arith.constant 0 : index
    %8 = vector.load %arg5[%c0_8, %c0_9] : memref<1x128xf32, #tpu.memory_space<vmem>>, vector<1x128xf32>
    %9 = vector.broadcast %8 : vector<1x128xf32> to vector<256x128xf32>
    %10 = arith.addf %7, %9 : vector<256x128xf32>
    %cst_10 = arith.constant 0.000000e+00 : f32
    %11 = vector.broadcast %cst_10 : f32 to vector<256x128xf32>
    %12 = arith.maximumf %5, %11 : vector<256x128xf32>
    %cst_11 = arith.constant 0.000000e+00 : f32
    %13 = vector.broadcast %cst_11 : f32 to vector<256x128xf32>
    %14 = arith.maximumf %10, %13 : vector<256x128xf32>
    %15 = arith.mulf %12, %14 : vector<256x128xf32>
    %c0_12 = arith.constant 0 : index
    %c0_13 = arith.constant 0 : index
    %16 = vector.load %arg6[%c0_12, %c0_13] : memref<256x128xf32, #tpu.memory_space<vmem>>, vector<256x128xf32>
    tpu.vector_store %arg6[%c0_12, %c0_13], %15 {strides = array<i32>} : memref<256x128xf32, #tpu.memory_space<vmem>>, vector<256x128xf32>,
    return
  }
  func.func @transform_0(%arg0: i32) -> (i32, i32) {
    %c0_i32 = arith.constant 0 : i32
    %c0_i32_0 = arith.constant 0 : i32
    return %arg0, %c0_i32 : i32, i32
  }
  func.func @transform_1(%arg0: i32) -> (i32, i32) {
    %c0_i32 = arith.constant 0 : i32
    %c0_i32_0 = arith.constant 0 : i32
    %c0_i32_1 = arith.constant 0 : i32
    return %c0_i32, %c0_i32_0 : i32, i32
  }
  func.func @transform_2(%arg0: i32) -> (i32, i32) {
    %c0_i32 = arith.constant 0 : i32
    %c0_i32_0 = arith.constant 0 : i32
    %c0_i32_1 = arith.constant 0 : i32
    return %c0_i32, %c0_i32_0 : i32, i32
  }
  func.func @transform_3(%arg0: i32) -> (i32, i32) {
    %c0_i32 = arith.constant 0 : i32
    %c0_i32_0 = arith.constant 0 : i32
    %c0_i32_1 = arith.constant 0 : i32
    return %c0_i32, %c0_i32_0 : i32, i32
  }
  func.func @transform_4(%arg0: i32) -> (i32, i32) {
    %c0_i32 = arith.constant 0 : i32
    %c0_i32_0 = arith.constant 0 : i32
    %c0_i32_1 = arith.constant 0 : i32
    return %c0_i32, %c0_i32_0 : i32, i32
  }
  func.func @transform_5(%arg0: i32) -> (i32, i32) {
    %c0_i32 = arith.constant 0 : i32
    %c0_i32_0 = arith.constant 0 : i32
    return %arg0, %c0_i32 : i32, i32
  }
}

</mosaic_0001>

<bundles_post_ra>
// kernel: correlator_conv_pallas.1
= control target key start
LH: loop header
LB: loop body
LE: loop exit
PB: predicated region body
PF: predicated region fallthrough
CT: control target
= control target key end

     0   :  { %s918_s18 = smov 0   ;;  %s1178_s0 = inlined_call_operand.vmem [shape: f32[512,40], index: 0, kind: input, shape index: {}]   ;;  %s1179_s1 = inlined_call_operand.vmem [shape: f32[40,128], index: 1, kind: input, shape index: {}]   ;;  %s1180_s2 = inlined_call_operand.vmem [shape: f32[1,128], index: 2, kind: input, shape index: {}]   ;;  %s1181_s3 = inlined_call_operand.vmem [shape: f32[40,128], index: 3, kind: input, shape index: {}]   ;;  %s1182_s4 = inlined_call_operand.vmem [shape: f32[1,128], index: 4, kind: input, shape index: {}]   ;;  %s1183_s5 = inlined_call_operand.vmem [shape: f32[512,128], index: 5, kind: output, shape index: {}]  }
   0x1 LB: > { %s785_s19 = sadd.s32 4294967295, %s886_s18   ;;  %p789_p0 = scmp.ge.s32.totalorder %s886_s18, 1  ;;  %s886_s18 = sphi %s918_s18, %s15_s18  }
   0x2   : > { %p188_p1 = scmp.lt.s32.totalorder %s886_s18, 3 }
   0x4   : > { %p189_p2 = pnand %p789_p0, %p188_p1 }
   0x5   : > { %s790_s26 = sshll.u32 (!%p189_p2), %s785_s19, 5 }
   0x6   : > { %192 = sbr.rel (%p189_p2) target bundleno = 281 (0x119), region = 40  ;;  %p217_p3 = scmp.lt.s32.totalorder (!%p189_p2), %s790_s26, 63 }
   0xb   : > { %v264_v0 = vld [vmem:[%s1179_s1 + $0x20] sm:$0xff]  ;;  %v263_v2 = vld [vmem:[%s1179_s1 + $0x18] sm:$0xff]  ;;  %v262_v4 = vld [vmem:[%s1179_s1 + $0x10] sm:$0xff]  ;;  %s1185_s26 = smov (!%p217_p3, %s790_s26), 63  ;;  %vm269_vm0 = vcmask 326656  }
   0xc   : > { %v483_v1 = vld [vmem:[%s1181_s3 + $0x20] sm:$0xff]  ;;  %860 = vmatpush.msra.mxu2 %v264_v0  ;;  %v482_v3 = vld [vmem:[%s1181_s3 + $0x18] sm:$0xff]  ;;  %v481_v5 = vld [vmem:[%s1181_s3 + $0x10] sm:$0xff]  ;;  %377 = vmatpush.msra.mxu0 %v264_v0  ;;  %s791_s12 = sshll.u32 %s1185_s26, 3 }
   0xd   : > { %865 = vmatpush.msra.mxu3 %v483_v1  ;;  %499 = vmatpush.msra.mxu1 %v483_v1  ;;  %v261_v6 = vld [vmem:[%s1179_s1 + $0x8] sm:$0xff]  ;;  %v260_v8 = vld [vmem:[%s1179_s1] sm:$0xff]  ;;  %s964_s20 = scalar_lea.vmem %s1178_s0, %s791_s12  ;;  %s1079_s28 = scalar_lea.vmem %s1183_s5, %s791_s12 }
   0xe   : > { %861 = vmatpush.msra.mxu2 %v263_v2  ;;  %v480_v7 = vld [vmem:[%s1181_s3 + $0x8] sm:$0xff]  ;;  %378 = vmatpush.msra.mxu0 %v263_v2  ;;  %v479_v9 = vld [vmem:[%s1181_s3] sm:$0xff]  ;;  %v246_v14 = vld [vmem:[%s964_s20 + $0x90] sm:$0xff] }
   0xf   : > { %866 = vmatpush.msra.mxu3 %v482_v3  ;;  %500 = vmatpush.msra.mxu1 %v482_v3  ;;  %v244_v10 = vld [vmem:[%s964_s20 + $0x80] sm:$0xff]  ;;  %v245_v12 = vld [vmem:[%s964_s20 + $0x88] sm:$0xff]  ;;  %v230_v15 = vld [vmem:[%s964_s20 + $0x10] sm:$0xff] }
  0x10   : > { %862 = vmatpush.msra.mxu2 %v262_v4  ;;  %379 = vmatpush.msra.mxu0 %v262_v4  ;;  %v228_v11 = vld [vmem:[%s964_s20] sm:$0xff]  ;;  %v229_v13 = vld [vmem:[%s964_s20 + $0x8] sm:$0xff]  ;;  %v247_v16 = vld [vmem:[%s964_s20 + $0x98] sm:$0xff] }
  0x11   : > { %867 = vmatpush.msra.mxu3 %v481_v5  ;;  %501 = vmatpush.msra.mxu1 %v481_v5  ;;  %v231_v17 = vld [vmem:[%s964_s20 + $0x18] sm:$0xff]  ;;  %v248_v18 = vld [vmem:[%s964_s20 + $0xa0] sm:$0xff]  ;;  %v249_v20 = vld [vmem:[%s964_s20 + $0xa8] sm:$0xff] }
  0x12   : > { %863 = vmatpush.msra.mxu2 %v261_v6  ;;  %380 = vmatpush.msra.mxu0 %v261_v6  ;;  %v232_v19 = vld [vmem:[%s964_s20 + $0x20] sm:$0xff]  ;;  %v233_v21 = vld [vmem:[%s964_s20 + $0x28] sm:$0xff]  ;;  %v250_v22 = vld [vmem:[%s964_s20 + $0xb0] sm:$0xff] }
  0x13   : > { %868 = vmatpush.msra.mxu3 %v480_v7  ;;  %502 = vmatpush.msra.mxu1 %v480_v7  ;;  %v234_v23 = vld [vmem:[%s964_s20 + $0x30] sm:$0xff]  ;;  %v251_v24 = vld [vmem:[%s964_s20 + $0xb8] sm:$0xff]  ;;  %v252_v26 = vld [vmem:[%s964_s20 + $0xc0] sm:$0xff] }
  0x14   : > { %864 = vmatpush.msra.mxu2 %v260_v8  ;;  %381 = vmatpush.msra.mxu0 %v260_v8  ;;  %v235_v25 = vld [vmem:[%s964_s20 + $0x38] sm:$0xff]  ;;  %v236_v27 = vld [vmem:[%s964_s20 + $0x40] sm:$0xff]  ;;  %v253_v28 = vld [vmem:[%s964_s20 + $0xc8] sm:$0xff] }
  0x15   : > { %869 = vmatpush.msra.mxu3 %v479_v9  ;;  %810 = vmatmul.msk.f32.vlgmr.msra.gmra.mxu2 %vm269_vm0, %v244_v10  ;;  %v237_v29 = vld [vmem:[%s964_s20 + $0x48] sm:$0xff]  ;;  %v254_v30 = vld [vmem:[%s964_s20 + $0xd0] sm:$0xff]  ;;  %v255_v32 = vld [vmem:[%s964_s20 + $0xd8] sm:$0xff] }
  0x16   : > { %842 = vmatmul.msk.f32.vlgmr.msra.gmra.mxu3 %vm269_vm0, %v244_v10  ;;  %503 = vmatpush.msra.mxu1 %v479_v9  ;;  %v238_v31 = vld [vmem:[%s964_s20 + $0x50] sm:$0xff]  ;;  %v239_v33 = vld [vmem:[%s964_s20 + $0x58] sm:$0xff]  ;;  %v256_v34 = vld [vmem:[%s964_s20 + $0xe0] sm:$0xff] }
  0x17   : > { %794 = vmatmul.msk.f32.vlgmr.msra.gmra.mxu0 %vm269_vm0, %v228_v11  ;;  %826 = vmatmul.msk.f32.vlgmr.msra.gmra.mxu1 %vm269_vm0, %v228_v11  ;;  %v240_v35 = vld [vmem:[%s964_s20 + $0x60] sm:$0xff]  ;;  %v257_v36 = vld [vmem:[%s964_s20 + $0xe8] sm:$0xff]  ;;  %v258_v38 = vld [vmem:[%s964_s20 + $0xf0] sm:$0xff] }
  0x18   : > { %v241_v37 = vld [vmem:[%s964_s20 + $0x68] sm:$0xff]  ;;  %v242_v39 = vld [vmem:[%s964_s20 + $0x70] sm:$0xff]  ;;  %v259_v40 = vld [vmem:[%s964_s20 + $0xf8] sm:$0xff] }
  0x19   : > { %v243_v41 = vld [vmem:[%s964_s20 + $0x78] sm:$0xff]  ;;  %v1065_v42 = vld [vmem:[%s1180_s2] ss:$0 sm:$0xff] }
  0x1a   : > { %v1070_v43 = vld [vmem:[%s1182_s4] ss:$0 sm:$0xff] }
  0x1d   : > { %811 = vmatmul.msk.f32.gmra.mxu2 %vm269_vm0, %v245_v12 }
  0x1e   : > { %843 = vmatmul.msk.f32.gmra.mxu3 %vm269_vm0, %v245_v12 }
  0x1f   : > { %795 = vmatmul.msk.f32.gmra.mxu0 %vm269_vm0, %v229_v13  ;;  %827 = vmatmul.msk.f32.gmra.mxu1 %vm269_vm0, %v229_v13 }
  0x25   : > { %812 = vmatmul.msk.f32.gmra.mxu2 %vm269_vm0, %v246_v14 }
  0x26   : > { %844 = vmatmul.msk.f32.gmra.mxu3 %vm269_vm0, %v246_v14 }
  0x27   : > { %796 = vmatmul.msk.f32.gmra.mxu0 %vm269_vm0, %v230_v15  ;;  %828 = vmatmul.msk.f32.gmra.mxu1 %vm269_vm0, %v230_v15 }
  0x2d   : > { %813 = vmatmul.msk.f32.gmra.mxu2 %vm269_vm0, %v247_v16 }
  0x2e   : > { %845 = vmatmul.msk.f32.gmra.mxu3 %vm269_vm0, %v247_v16 }
  0x2f   : > { %797 = vmatmul.msk.f32.gmra.mxu0 %vm269_vm0, %v231_v17  ;;  %829 = vmatmul.msk.f32.gmra.mxu1 %vm269_vm0, %v231_v17 }
  0x35   : > { %814 = vmatmul.msk.f32.gmra.mxu2 %vm269_vm0, %v248_v18 }
  0x36   : > { %846 = vmatmul.msk.f32.gmra.mxu3 %vm269_vm0, %v248_v18 }
  0x37   : > { %798 = vmatmul.msk.f32.gmra.mxu0 %vm269_vm0, %v232_v19  ;;  %830 = vmatmul.msk.f32.gmra.mxu1 %vm269_vm0, %v232_v19 }
  0x3d   : > { %815 = vmatmul.msk.f32.gmra.mxu2 %vm269_vm0, %v249_v20 }
  0x3e   : > { %847 = vmatmul.msk.f32.gmra.mxu3 %vm269_vm0, %v249_v20 }
  0x3f   : > { %799 = vmatmul.msk.f32.gmra.mxu0 %vm269_vm0, %v233_v21  ;;  %831 = vmatmul.msk.f32.gmra.mxu1 %vm269_vm0, %v233_v21 }
  0x45   : > { %816 = vmatmul.msk.f32.gmra.mxu2 %vm269_vm0, %v250_v22 }
  0x46   : > { %848 = vmatmul.msk.f32.gmra.mxu3 %vm269_vm0, %v250_v22 }
  0x47   : > { %800 = vmatmul.msk.f32.gmra.mxu0 %vm269_vm0, %v234_v23  ;;  %832 = vmatmul.msk.f32.gmra.mxu1 %vm269_vm0, %v234_v23 }
  0x4d   : > { %817 = vmatmul.msk.f32.gmra.mxu2 %vm269_vm0, %v251_v24 }
  0x4e   : > { %849 = vmatmul.msk.f32.gmra.mxu3 %vm269_vm0, %v251_v24 }
  0x4f   : > { %801 = vmatmul.msk.f32.gmra.mxu0 %vm269_vm0, %v235_v25  ;;  %833 = vmatmul.msk.f32.gmra.mxu1 %vm269_vm0, %v235_v25 }
  0x55   : > { %818 = vmatmul.msk.f32.gmra.mxu2 %vm269_vm0, %v252_v26 }
  0x56   : > { %850 = vmatmul.msk.f32.gmra.mxu3 %vm269_vm0, %v252_v26 }
  0x57   : > { %802 = vmatmul.msk.f32.gmra.mxu0 %vm269_vm0, %v236_v27  ;;  %834 = vmatmul.msk.f32.gmra.mxu1 %vm269_vm0, %v236_v27 }
  0x5d   : > { %819 = vmatmul.msk.f32.gmra.mxu2 %vm269_vm0, %v253_v28 }
  0x5e   : > { %851 = vmatmul.msk.f32.gmra.mxu3 %vm269_vm0, %v253_v28 }
  0x5f   : > { %803 = vmatmul.msk.f32.gmra.mxu0 %vm269_vm0, %v237_v29  ;;  %835 = vmatmul.msk.f32.gmra.mxu1 %vm269_vm0, %v237_v29 }
  0x65   : > { %820 = vmatmul.msk.f32.gmra.mxu2 %vm269_vm0, %v254_v30 }
  0x66   : > { %852 = vmatmul.msk.f32.gmra.mxu3 %vm269_vm0, %v254_v30 }
  0x67   : > { %804 = vmatmul.msk.f32.gmra.mxu0 %vm269_vm0, %v238_v31  ;;  %836 = vmatmul.msk.f32.gmra.mxu1 %vm269_vm0, %v238_v31 }
  0x6d   : > { %821 = vmatmul.msk.f32.gmra.mxu2 %vm269_vm0, %v255_v32 }
  0x6e   : > { %853 = vmatmul.msk.f32.gmra.mxu3 %vm269_vm0, %v255_v32 }
  0x6f   : > { %805 = vmatmul.msk.f32.gmra.mxu0 %vm269_vm0, %v239_v33  ;;  %837 = vmatmul.msk.f32.gmra.mxu1 %vm269_vm0, %v239_v33 }
  0x75   : > { %822 = vmatmul.msk.f32.gmra.mxu2 %vm269_vm0, %v256_v34 }
  0x76   : > { %854 = vmatmul.msk.f32.gmra.mxu3 %vm269_vm0, %v256_v34 }
  0x77   : > { %806 = vmatmul.msk.f32.gmra.mxu0 %vm269_vm0, %v240_v35  ;;  %838 = vmatmul.msk.f32.gmra.mxu1 %vm269_vm0, %v240_v35 }
  0x7d   : > { %823 = vmatmul.msk.f32.gmra.mxu2 %vm269_vm0, %v257_v36 }
  0x7e   : > { %855 = vmatmul.msk.f32.gmra.mxu3 %vm269_vm0, %v257_v36 }
  0x7f   : > { %807 = vmatmul.msk.f32.gmra.mxu0 %vm269_vm0, %v241_v37  ;;  %839 = vmatmul.msk.f32.gmra.mxu1 %vm269_vm0, %v241_v37 }
  0x85   : > { %824 = vmatmul.msk.f32.gmra.mxu2 %vm269_vm0, %v258_v38 }
  0x86   : > { %856 = vmatmul.msk.f32.gmra.mxu3 %vm269_vm0, %v258_v38 }
  0x87   : > { %808 = vmatmul.msk.f32.gmra.mxu0 %vm269_vm0, %v242_v39  ;;  %840 = vmatmul.msk.f32.gmra.mxu1 %vm269_vm0, %v242_v39 }
  0x8d   : > { %825 = vmatmul.msk.f32.gmra.mxu2 %vm269_vm0, %v259_v40 }
  0x8e   : > { %857 = vmatmul.msk.f32.gmra.mxu3 %vm269_vm0, %v259_v40 }
  0x8f   : > { %809 = vmatmul.msk.f32.gmra.mxu0 %vm269_vm0, %v243_v41  ;;  %841 = vmatmul.msk.f32.gmra.mxu1 %vm269_vm0, %v243_v41 }
  0x94   : > { %v383_v44 = vpop.f32.mrf.mxu0  ;;  %v505_v45 = vpop.f32.mrf.mxu1 }
  0x95   : > { %v384_v46 = vadd.f32 %v1065_v42, %v383_v44  ;;  %v506_v47 = vadd.f32 %v1070_v43, %v505_v45 }
  0x97   : > { %v601_v48 = vmax.f32 %v384_v46, 0.0  ;;  %v633_v49 = vmax.f32 %v506_v47, 0.0 }
  0x98   : > { %v431_v50 = vpop.f32.mrf.mxu2 }
  0x99   : > { %v553_v51 = vpop.f32.mrf.mxu3  ;;  %v432_v52 = vadd.f32 %v1065_v42, %v431_v50  ;;  %v665_v53 = vmul.f32 %v633_v49, %v601_v48 }
  0x9a   : > { %v554_v54 = vadd.f32 %v1070_v43, %v553_v51 }
  0x9b   : > { %v617_v55 = vmax.f32 %v432_v52, 0.0  ;;  %697 = vst [vmem:[%s1079_s28] sm:$0xff] %v665_v53 }
  0x9c   : > { %v649_v56 = vmax.f32 %v554_v54, 0.0  ;;  %v386_v57 = vpop.f32.mrf.mxu0  ;;  %v508_v58 = vpop.f32.mrf.mxu1 }
  0x9d   : > { %v387_v60 = vadd.f32 %v1065_v42, %v386_v57  ;;  %v509_v61 = vadd.f32 %v1070_v43, %v508_v58 }
  0x9e   : > { %v681_v59 = vmul.f32 %v649_v56, %v617_v55 }
  0x9f   : > { %v602_v62 = vmax.f32 %v387_v60, 0.0  ;;  %v634_v63 = vmax.f32 %v509_v61, 0.0 }
  0xa0   : > { %713 = vst [vmem:[%s1079_s28 + $0x80] sm:$0xff] %v681_v59  ;;  %v434_v0 = vpop.f32.mrf.mxu2 }
  0xa1   : > { %v556_v1 = vpop.f32.mrf.mxu3  ;;  %v435_v2 = vadd.f32 %v1065_v42, %v434_v0  ;;  %v666_v3 = vmul.f32 %v634_v63, %v602_v62 }
  0xa2   : > { %v557_v4 = vadd.f32 %v1070_v43, %v556_v1 }
  0xa3   : > { %v618_v5 = vmax.f32 %v435_v2, 0.0  ;;  %698 = vst [vmem:[%s1079_s28 + $0x8] sm:$0xff] %v666_v3 }
  0xa4   : > { %v650_v6 = vmax.f32 %v557_v4, 0.0  ;;  %v389_v7 = vpop.f32.mrf.mxu0  ;;  %v511_v8 = vpop.f32.mrf.mxu1 }
  0xa5   : > { %v390_v10 = vadd.f32 %v1065_v42, %v389_v7  ;;  %v512_v11 = vadd.f32 %v1070_v43, %v511_v8 }
  0xa6   : > { %v682_v9 = vmul.f32 %v650_v6, %v618_v5 }
  0xa7   : > { %v603_v12 = vmax.f32 %v390_v10, 0.0  ;;  %v635_v13 = vmax.f32 %v512_v11, 0.0 }
  0xa8   : > { %714 = vst [vmem:[%s1079_s28 + $0x88] sm:$0xff] %v682_v9  ;;  %v437_v14 = vpop.f32.mrf.mxu2 }
  0xa9   : > { %v559_v15 = vpop.f32.mrf.mxu3  ;;  %v438_v16 = vadd.f32 %v1065_v42, %v437_v14  ;;  %v667_v17 = vmul.f32 %v635_v13, %v603_v12 }
  0xaa   : > { %v560_v18 = vadd.f32 %v1070_v43, %v559_v15 }
  0xab   : > { %v619_v19 = vmax.f32 %v438_v16, 0.0  ;;  %699 = vst [vmem:[%s1079_s28 + $0x10] sm:$0xff] %v667_v17 }
  0xac   : > { %v651_v20 = vmax.f32 %v560_v18, 0.0  ;;  %v392_v21 = vpop.f32.mrf.mxu0  ;;  %v514_v22 = vpop.f32.mrf.mxu1 }
  0xad   : > { %v393_v24 = vadd.f32 %v1065_v42, %v392_v21  ;;  %v515_v25 = vadd.f32 %v1070_v43, %v514_v22 }
  0xae   : > { %v683_v23 = vmul.f32 %v651_v20, %v619_v19 }
  0xaf   : > { %v604_v26 = vmax.f32 %v393_v24, 0.0  ;;  %v636_v27 = vmax.f32 %v515_v25, 0.0 }
  0xb0   : > { %715 = vst [vmem:[%s1079_s28 + $0x90] sm:$0xff] %v683_v23  ;;  %v440_v28 = vpop.f32.mrf.mxu2 }
  0xb1   : > { %v562_v29 = vpop.f32.mrf.mxu3  ;;  %v441_v30 = vadd.f32 %v1065_v42, %v440_v28  ;;  %v668_v31 = vmul.f32 %v636_v27, %v604_v26 }
  0xb2   : > { %v563_v32 = vadd.f32 %v1070_v43, %v562_v29 }
  0xb3   : > { %v620_v33 = vmax.f32 %v441_v30, 0.0  ;;  %700 = vst [vmem:[%s1079_s28 + $0x18] sm:$0xff] %v668_v31 }
  0xb4   : > { %v652_v34 = vmax.f32 %v563_v32, 0.0  ;;  %v395_v35 = vpop.f32.mrf.mxu0  ;;  %v517_v36 = vpop.f32.mrf.mxu1 }
  0xb5   : > { %v396_v38 = vadd.f32 %v1065_v42, %v395_v35  ;;  %v518_v39 = vadd.f32 %v1070_v43, %v517_v36 }
  0xb6   : > { %v684_v37 = vmul.f32 %v652_v34, %v620_v33 }
  0xb7   : > { %v605_v40 = vmax.f32 %v396_v38, 0.0  ;;  %v637_v41 = vmax.f32 %v518_v39, 0.0 }
  0xb8   : > { %716 = vst [vmem:[%s1079_s28 + $0x98] sm:$0xff] %v684_v37  ;;  %v443_v44 = vpop.f32.mrf.mxu2 }
  0xb9   : > { %v565_v45 = vpop.f32.mrf.mxu3  ;;  %v444_v46 = vadd.f32 %v1065_v42, %v443_v44  ;;  %v669_v47 = vmul.f32 %v637_v41, %v605_v40 }
  0xba   : > { %v566_v48 = vadd.f32 %v1070_v43, %v565_v45 }
  0xbb   : > { %v621_v49 = vmax.f32 %v444_v46, 0.0  ;;  %701 = vst [vmem:[%s1079_s28 + $0x20] sm:$0xff] %v669_v47 }
  0xbc   : > { %v653_v50 = vmax.f32 %v566_v48, 0.0  ;;  %v398_v51 = vpop.f32.mrf.mxu0  ;;  %v520_v52 = vpop.f32.mrf.mxu1 }
  0xbd   : > { %v399_v54 = vadd.f32 %v1065_v42, %v398_v51  ;;  %v521_v55 = vadd.f32 %v1070_v43, %v520_v52 }
  0xbe   : > { %v685_v53 = vmul.f32 %v653_v50, %v621_v49 }
  0xbf   : > { %v606_v56 = vmax.f32 %v399_v54, 0.0  ;;  %v638_v57 = vmax.f32 %v521_v55, 0.0 }
  0xc0   : > { %717 = vst [vmem:[%s1079_s28 + $0xa0] sm:$0xff] %v685_v53  ;;  %v446_v58 = vpop.f32.mrf.mxu2 }
  0xc1   : > { %v568_v59 = vpop.f32.mrf.mxu3  ;;  %v447_v60 = vadd.f32 %v1065_v42, %v446_v58  ;;  %v670_v61 = vmul.f32 %v638_v57, %v606_v56 }
  0xc2   : > { %v569_v62 = vadd.f32 %v1070_v43, %v568_v59 }
  0xc3   : > { %v622_v63 = vmax.f32 %v447_v60, 0.0  ;;  %702 = vst [vmem:[%s1079_s28 + $0x28] sm:$0xff] %v670_v61 }
  0xc4   : > { %v654_v0 = vmax.f32 %v569_v62, 0.0  ;;  %v401_v1 = vpop.f32.mrf.mxu0  ;;  %v523_v2 = vpop.f32.mrf.mxu1 }
  0xc5   : > { %v402_v4 = vadd.f32 %v1065_v42, %v401_v1  ;;  %v524_v5 = vadd.f32 %v1070_v43, %v523_v2 }
  0xc6   : > { %v686_v3 = vmul.f32 %v654_v0, %v622_v63 }
  0xc7   : > { %v607_v6 = vmax.f32 %v402_v4, 0.0  ;;  %v639_v7 = vmax.f32 %v524_v5, 0.0 }
  0xc8   : > { %718 = vst [vmem:[%s1079_s28 + $0xa8] sm:$0xff] %v686_v3  ;;  %v449_v8 = vpop.f32.mrf.mxu2 }
  0xc9   : > { %v571_v9 = vpop.f32.mrf.mxu3  ;;  %v450_v10 = vadd.f32 %v1065_v42, %v449_v8  ;;  %v671_v11 = vmul.f32 %v639_v7, %v607_v6 }
  0xca   : > { %v572_v12 = vadd.f32 %v1070_v43, %v571_v9 }
  0xcb   : > { %v623_v13 = vmax.f32 %v450_v10, 0.0  ;;  %703 = vst [vmem:[%s1079_s28 + $0x30] sm:$0xff] %v671_v11 }
  0xcc   : > { %v655_v14 = vmax.f32 %v572_v12, 0.0  ;;  %v404_v15 = vpop.f32.mrf.mxu0  ;;  %v526_v16 = vpop.f32.mrf.mxu1 }
  0xcd   : > { %v405_v18 = vadd.f32 %v1065_v42, %v404_v15  ;;  %v527_v19 = vadd.f32 %v1070_v43, %v526_v16 }
  0xce   : > { %v687_v17 = vmul.f32 %v655_v14, %v623_v13 }
  0xcf   : > { %v608_v20 = vmax.f32 %v405_v18, 0.0  ;;  %v640_v21 = vmax.f32 %v527_v19, 0.0 }
  0xd0   : > { %719 = vst [vmem:[%s1079_s28 + $0xb0] sm:$0xff] %v687_v17  ;;  %v452_v22 = vpop.f32.mrf.mxu2 }
  0xd1   : > { %v574_v23 = vpop.f32.mrf.mxu3  ;;  %v453_v24 = vadd.f32 %v1065_v42, %v452_v22  ;;  %v672_v25 = vmul.f32 %v640_v21, %v608_v20 }
  0xd2   : > { %v575_v26 = vadd.f32 %v1070_v43, %v574_v23 }
  0xd3   : > { %v624_v27 = vmax.f32 %v453_v24, 0.0  ;;  %704 = vst [vmem:[%s1079_s28 + $0x38] sm:$0xff] %v672_v25 }
  0xd4   : > { %v656_v28 = vmax.f32 %v575_v26, 0.0  ;;  %v407_v29 = vpop.f32.mrf.mxu0  ;;  %v529_v30 = vpop.f32.mrf.mxu1 }
  0xd5   : > { %v408_v32 = vadd.f32 %v1065_v42, %v407_v29  ;;  %v530_v33 = vadd.f32 %v1070_v43, %v529_v30 }
  0xd6   : > { %v688_v31 = vmul.f32 %v656_v28, %v624_v27 }
  0xd7   : > { %v609_v34 = vmax.f32 %v408_v32, 0.0  ;;  %v641_v35 = vmax.f32 %v530_v33, 0.0 }
  0xd8   : > { %720 = vst [vmem:[%s1079_s28 + $0xb8] sm:$0xff] %v688_v31  ;;  %v455_v36 = vpop.f32.mrf.mxu2 }
  0xd9   : > { %v577_v37 = vpop.f32.mrf.mxu3  ;;  %v456_v38 = vadd.f32 %v1065_v42, %v455_v36  ;;  %v673_v39 = vmul.f32 %v641_v35, %v609_v34 }
  0xda   : > { %v578_v40 = vadd.f32 %v1070_v43, %v577_v37 }
  0xdb   : > { %v625_v41 = vmax.f32 %v456_v38, 0.0  ;;  %705 = vst [vmem:[%s1079_s28 + $0x40] sm:$0xff] %v673_v39 }
  0xdc   : > { %v657_v44 = vmax.f32 %v578_v40, 0.0  ;;  %v410_v45 = vpop.f32.mrf.mxu0  ;;  %v532_v46 = vpop.f32.mrf.mxu1 }
  0xdd   : > { %v411_v48 = vadd.f32 %v1065_v42, %v410_v45  ;;  %v533_v49 = vadd.f32 %v1070_v43, %v532_v46 }
  0xde   : > { %v689_v47 = vmul.f32 %v657_v44, %v625_v41 }
  0xdf   : > { %v610_v50 = vmax.f32 %v411_v48, 0.0  ;;  %v642_v51 = vmax.f32 %v533_v49, 0.0 }
  0xe0   : > { %721 = vst [vmem:[%s1079_s28 + $0xc0] sm:$0xff] %v689_v47  ;;  %v458_v52 = vpop.f32.mrf.mxu2 }
  0xe1   : > { %v580_v53 = vpop.f32.mrf.mxu3  ;;  %v459_v54 = vadd.f32 %v1065_v42, %v458_v52  ;;  %v674_v55 = vmul.f32 %v642_v51, %v610_v50 }
  0xe2   : > { %v581_v56 = vadd.f32 %v1070_v43, %v580_v53 }
  0xe3   : > { %v626_v57 = vmax.f32 %v459_v54, 0.0  ;;  %706 = vst [vmem:[%s1079_s28 + $0x48] sm:$0xff] %v674_v55 }
  0xe4   : > { %v658_v58 = vmax.f32 %v581_v56, 0.0  ;;  %v413_v59 = vpop.f32.mrf.mxu0  ;;  %v535_v60 = vpop.f32.mrf.mxu1 }
  0xe5   : > { %v414_v62 = vadd.f32 %v1065_v42, %v413_v59  ;;  %v536_v63 = vadd.f32 %v1070_v43, %v535_v60 }
  0xe6   : > { %v690_v61 = vmul.f32 %v658_v58, %v626_v57 }
  0xe7   : > { %v611_v0 = vmax.f32 %v414_v62, 0.0  ;;  %v643_v1 = vmax.f32 %v536_v63, 0.0 }
  0xe8   : > { %722 = vst [vmem:[%s1079_s28 + $0xc8] sm:$0xff] %v690_v61  ;;  %v461_v2 = vpop.f32.mrf.mxu2 }
  0xe9   : > { %v583_v3 = vpop.f32.mrf.mxu3  ;;  %v462_v4 = vadd.f32 %v1065_v42, %v461_v2  ;;  %v675_v5 = vmul.f32 %v643_v1, %v611_v0 }
  0xea   : > { %v584_v6 = vadd.f32 %v1070_v43, %v583_v3 }
  0xeb   : > { %v627_v7 = vmax.f32 %v462_v4, 0.0  ;;  %707 = vst [vmem:[%s1079_s28 + $0x50] sm:$0xff] %v675_v5 }
  0xec   : > { %v659_v8 = vmax.f32 %v584_v6, 0.0  ;;  %v416_v9 = vpop.f32.mrf.mxu0  ;;  %v538_v10 = vpop.f32.mrf.mxu1 }
  0xed   : > { %v417_v12 = vadd.f32 %v1065_v42, %v416_v9  ;;  %v539_v13 = vadd.f32 %v1070_v43, %v538_v10 }
  0xee   : > { %v691_v11 = vmul.f32 %v659_v8, %v627_v7 }
  0xef   : > { %v612_v14 = vmax.f32 %v417_v12, 0.0  ;;  %v644_v15 = vmax.f32 %v539_v13, 0.0 }
  0xf0   : > { %723 = vst [vmem:[%s1079_s28 + $0xd0] sm:$0xff] %v691_v11  ;;  %v464_v16 = vpop.f32.mrf.mxu2 }
  0xf1   : > { %v586_v17 = vpop.f32.mrf.mxu3  ;;  %v465_v18 = vadd.f32 %v1065_v42, %v464_v16  ;;  %v676_v19 = vmul.f32 %v644_v15, %v612_v14 }
  0xf2   : > { %v587_v20 = vadd.f32 %v1070_v43, %v586_v17 }
  0xf3   : > { %v628_v21 = vmax.f32 %v465_v18, 0.0  ;;  %708 = vst [vmem:[%s1079_s28 + $0x58] sm:$0xff] %v676_v19 }
  0xf4   : > { %v660_v22 = vmax.f32 %v587_v20, 0.0  ;;  %v419_v23 = vpop.f32.mrf.mxu0  ;;  %v541_v24 = vpop.f32.mrf.mxu1 }
  0xf5   : > { %v420_v26 = vadd.f32 %v1065_v42, %v419_v23  ;;  %v542_v27 = vadd.f32 %v1070_v43, %v541_v24 }
  0xf6   : > { %v692_v25 = vmul.f32 %v660_v22, %v628_v21 }
  0xf7   : > { %v613_v28 = vmax.f32 %v420_v26, 0.0  ;;  %v645_v29 = vmax.f32 %v542_v27, 0.0 }
  0xf8   : > { %724 = vst [vmem:[%s1079_s28 + $0xd8] sm:$0xff] %v692_v25  ;;  %v467_v30 = vpop.f32.mrf.mxu2 }
  0xf9   : > { %v589_v31 = vpop.f32.mrf.mxu3  ;;  %v468_v32 = vadd.f32 %v1065_v42, %v467_v30  ;;  %v677_v33 = vmul.f32 %v645_v29, %v613_v28 }
  0xfa   : > { %v590_v34 = vadd.f32 %v1070_v43, %v589_v31 }
  0xfb   : > { %v629_v35 = vmax.f32 %v468_v32, 0.0  ;;  %709 = vst [vmem:[%s1079_s28 + $0x60] sm:$0xff] %v677_v33 }
  0xfc   : > { %v661_v36 = vmax.f32 %v590_v34, 0.0  ;;  %v422_v37 = vpop.f32.mrf.mxu0  ;;  %v544_v38 = vpop.f32.mrf.mxu1 }
  0xfd   : > { %v423_v40 = vadd.f32 %v1065_v42, %v422_v37  ;;  %v545_v41 = vadd.f32 %v1070_v43, %v544_v38 }
  0xfe   : > { %v693_v39 = vmul.f32 %v661_v36, %v629_v35 }
  0xff   : > { %v614_v44 = vmax.f32 %v423_v40, 0.0  ;;  %v646_v45 = vmax.f32 %v545_v41, 0.0 }
 0x100   : > { %725 = vst [vmem:[%s1079_s28 + $0xe0] sm:$0xff] %v693_v39  ;;  %v470_v46 = vpop.f32.mrf.mxu2 }
 0x101   : > { %v592_v47 = vpop.f32.mrf.mxu3  ;;  %v471_v48 = vadd.f32 %v1065_v42, %v470_v46  ;;  %v678_v49 = vmul.f32 %v646_v45, %v614_v44 }
 0x102   : > { %v593_v50 = vadd.f32 %v1070_v43, %v592_v47 }
 0x103   : > { %v630_v51 = vmax.f32 %v471_v48, 0.0  ;;  %710 = vst [vmem:[%s1079_s28 + $0x68] sm:$0xff] %v678_v49 }
 0x104   : > { %v662_v52 = vmax.f32 %v593_v50, 0.0  ;;  %v425_v53 = vpop.f32.mrf.mxu0  ;;  %v547_v54 = vpop.f32.mrf.mxu1 }
 0x105   : > { %v426_v56 = vadd.f32 %v1065_v42, %v425_v53  ;;  %v548_v57 = vadd.f32 %v1070_v43, %v547_v54 }
 0x106   : > { %v694_v55 = vmul.f32 %v662_v52, %v630_v51 }
 0x107   : > { %v615_v58 = vmax.f32 %v426_v56, 0.0  ;;  %v647_v59 = vmax.f32 %v548_v57, 0.0 }
 0x108   : > { %726 = vst [vmem:[%s1079_s28 + $0xe8] sm:$0xff] %v694_v55  ;;  %v473_v60 = vpop.f32.mrf.mxu2 }
 0x109   : > { %v595_v61 = vpop.f32.mrf.mxu3  ;;  %v474_v62 = vadd.f32 %v1065_v42, %v473_v60  ;;  %v679_v63 = vmul.f32 %v647_v59, %v615_v58 }
 0x10a   : > { %v596_v0 = vadd.f32 %v1070_v43, %v595_v61 }
 0x10b   : > { %v631_v1 = vmax.f32 %v474_v62, 0.0  ;;  %711 = vst [vmem:[%s1079_s28 + $0x70] sm:$0xff] %v679_v63 }
 0x10c   : > { %v663_v2 = vmax.f32 %v596_v0, 0.0  ;;  %v428_v3 = vpop.f32.mrf.mxu0  ;;  %v550_v4 = vpop.f32.mrf.mxu1 }
 0x10d   : > { %v429_v6 = vadd.f32 %v1065_v42, %v428_v3  ;;  %v551_v7 = vadd.f32 %v1070_v43, %v550_v4 }
 0x10e   : > { %v695_v5 = vmul.f32 %v663_v2, %v631_v1 }
 0x10f   : > { %v616_v8 = vmax.f32 %v429_v6, 0.0  ;;  %v648_v9 = vmax.f32 %v551_v7, 0.0 }
 0x110   : > { %727 = vst [vmem:[%s1079_s28 + $0xf0] sm:$0xff] %v695_v5  ;;  %v476_v10 = vpop.f32.mrf.mxu2 }
 0x111   : > { %v598_v11 = vpop.f32.mrf.mxu3  ;;  %v477_v12 = vadd.f32 %v1065_v42, %v476_v10  ;;  %v680_v13 = vmul.f32 %v648_v9, %v616_v8 }
 0x112   : > { %v599_v14 = vadd.f32 %v1070_v43, %v598_v11 }
 0x113   : > { %v632_v15 = vmax.f32 %v477_v12, 0.0  ;;  %712 = vst [vmem:[%s1079_s28 + $0x78] sm:$0xff] %v680_v13 }
 0x114   : > { %v664_v16 = vmax.f32 %v599_v14, 0.0 }
 0x116   : > { %v696_v17 = vmul.f32 %v664_v16, %v632_v15 }
 0x118   : > { %728 = vst [vmem:[%s1079_s28 + $0xf8] sm:$0xff] %v696_v17 }
 0x119 PF: > { %s15_s18 = sadd.s32 1, %s886_s18  }
 0x11a   : > { %p12_p4 = scmp.ge.s32.totalorder %s15_s18, 4  }
 0x11c   :  { %14 = sbr.rel (!%p12_p4) target bundleno = 1 (0x1), region = 70 }

</bundles_post_ra>
